<compile_context>
chip_gen: v6e
topology: v6e:2x2x1
jax: 0.10.0
libtpu: 0.0.40
codegen_flags: <defaults>
</compile_context>

<pallas_src>
import functools

import jax
import jax.numpy as jnp
from jax import lax
from jax.experimental import pallas as pl
from jax.experimental.pallas import tpu as pltpu


def _round_up(x, m):
    return (x + m - 1) // m * m


def _default_vmem_limit():
    # ~75% of physical VMEM: 96 MiB on 128-MiB chips (v5e/v6e), 48 MiB on v7x.
    try:
        cap = int(pltpu.get_tpu_info().vmem_capacity_bytes)
        return int(min(cap * 3 // 4, 96 * 1024 * 1024))
    except Exception:
        return 48 * 1024 * 1024


_VMEM_LIMIT = _default_vmem_limit()


# --------------------- row-tiled linear: y = x @ W (+ b) --------------------

def _linear_bias_kernel(x_ref, w_ref, b_ref, o_ref):
    acc = jnp.dot(x_ref[...], w_ref[...], preferred_element_type=jnp.float32)
    o_ref[...] = (acc + b_ref[...]).astype(o_ref.dtype)


def _linear_nobias_kernel(x_ref, w_ref, o_ref):
    o_ref[...] = jnp.dot(x_ref[...], w_ref[...],
                         preferred_element_type=jnp.float32).astype(o_ref.dtype)


def _pick_row_tile(rows, tm_max=256):
    """Row tile: 16-aligned (bf16 sublane packing); split into >=2 tiles when
    possible so both TensorCores get work on v7x."""
    rows16 = _round_up(rows, 16)
    if rows16 <= tm_max:
        if rows16 >= 32 and rows16 % 32 == 0:
            return rows16 // 2
        return rows16
    return tm_max


def _linear(x2d, w, b, out_dtype, tm_max=256):
    """x2d: (rows, K); w: (K, N); b: (N,) or None. Returns (rows, N)."""
    rows, kdim = x2d.shape
    ndim = w.shape[1]

    tm = _pick_row_tile(rows, tm_max)
    rows_p = _round_up(rows, tm)
    if rows_p != rows:
        x2d = jnp.pad(x2d, ((0, rows_p - rows), (0, 0)))

    # NOTE: weight/bias index_maps are constant so they stay VMEM-resident;
    # default double-buffering only wastes one extra weight copy of VMEM,
    # negligible at these sizes.
    if b is not None:
        kernel = _linear_bias_kernel
        in_specs = [
            pl.BlockSpec((tm, kdim), lambda i: (i, 0)),     # pipelined row tile
            pl.BlockSpec((kdim, ndim), lambda i: (0, 0)),   # resident weight
            pl.BlockSpec((1, ndim), lambda i: (0, 0)),      # resident bias
        ]
        args = (x2d, w, b.astype(jnp.float32).reshape(1, ndim))
    else:
        kernel = _linear_nobias_kernel
        in_specs = [
            pl.BlockSpec((tm, kdim), lambda i: (i, 0)),
            pl.BlockSpec((kdim, ndim), lambda i: (0, 0)),
        ]
        args = (x2d, w)

    out = pl.pallas_call(
        kernel,
        out_shape=jax.ShapeDtypeStruct((rows_p, ndim), out_dtype),
        grid_spec=pltpu.PrefetchScalarGridSpec(
            num_scalar_prefetch=0,
            grid=(rows_p // tm,),
            in_specs=in_specs,
            out_specs=pl.BlockSpec((tm, ndim), lambda i: (i, 0)),
        ),
        compiler_params=pltpu.CompilerParams(
            dimension_semantics=("parallel",),   # shard row tiles across TCs
            vmem_limit_bytes=_VMEM_LIMIT,
        ),
        cost_estimate=pl.CostEstimate(
            flops=2 * rows_p * kdim * ndim,
            transcendentals=0,
            bytes_accessed=int(
                x2d.size * x2d.dtype.itemsize
                + w.size * w.dtype.itemsize
                + (0 if b is None else ndim * 4)
                + rows_p * ndim * jnp.dtype(out_dtype).itemsize
            ),
        ),
    )(*args)
    return out[:rows] if rows_p != rows else out


# -------------------- flash-attention core (online softmax) -----------------
#
# Reads q/k/v directly from the fused qkv activation laid out as
#   qkv[b, n, :] = [q_h0 .. q_h{H-1} | k_h0 .. k_h{H-1} | v_h0 .. v_h{H-1}]
# (each head dh wide). h_blk heads are processed per grid step so every block is
# >=128 lanes wide (lane-dense DMAs, unmasked stores), and the output is written
# straight into the merged-head 'b n (h d)' layout -- no HBM head transposes.

def _flash_attn_kernel(q_ref, k_ref, v_ref, o_ref, m_sc, l_sc, acc_sc,
                       *, scale, n_valid, tk, h_blk, dh, padded):
    ki = pl.program_id(3)

    @pl.when(ki == 0)
    def _init():
        m_sc[...] = jnp.full_like(m_sc[...], -jnp.inf)
        l_sc[...] = jnp.zeros_like(l_sc[...])
        acc_sc[...] = jnp.zeros_like(acc_sc[...])

    q = q_ref[0]                      # (tq, h_blk*dh)  bf16
    k = k_ref[0]                      # (tk, h_blk*dh)
    v = v_ref[0]

    if padded:                        # static: only compiled when seq is padded
        col = ki * tk + lax.broadcasted_iota(jnp.int32, (q.shape[0], tk), 1)
        kv_mask = col < n_valid       # shared across the heads of this block

    for h in range(h_blk):            # static unroll over the packed heads
        sl = slice(h * dh, (h + 1) * dh)
        # s = q_h @ k_h^T * scale, f32 accumulation on the MXU.
        s = lax.dot_general(q[:, sl], k[:, sl], (((1,), (1,)), ((), ())),
                            preferred_element_type=jnp.float32) * scale
        if padded:
            # kv tile 0 always holds >=1 valid key (n_valid >= 1), so m stays
            # finite and padded keys never receive exp(0) weight.
            s = jnp.where(kv_mask, s, -1e30)

        m_prev = m_sc[h]                                      # (tq, 1)
        m_new = jnp.maximum(m_prev, s.max(axis=-1, keepdims=True))
        alpha = jnp.exp(m_prev - m_new)
        p = jnp.exp(s - m_new)
        l_sc[h] = alpha * l_sc[h] + p.sum(axis=-1, keepdims=True)
        acc_sc[h] = alpha * acc_sc[h] + jnp.dot(
            p.astype(v.dtype), v[:, sl], preferred_element_type=jnp.float32)
        m_sc[h] = m_new

    @pl.when(ki == pl.num_programs(3) - 1)
    def _finalize():
        outs = []
        for h in range(h_blk):
            inv_l = pl.reciprocal(l_sc[h], approx=True)   # EUP slot, ~free
            outs.append(acc_sc[h] * inv_l)
        # (tq, h_blk*dh): lane-dense (>=128 wide) store straight into 'b n (h d)'.
        o_ref[0] = jnp.concatenate(outs, axis=-1).astype(o_ref.dtype)


def _pick_head_block(heads, dh):
    """Largest head pack with h_blk*dh a multiple of 128 lanes and <= 256."""
    if dh % 128 == 0:
        return 1
    for cand in range(min(heads, max(1, 256 // dh)), 0, -1):
        if heads % cand == 0 and (cand * dh) % 128 == 0:
            return cand
    raise ValueError(
        f"head packing needs h_blk*dim_head % 128 == 0 (heads={heads}, dim_head={dh})")


def _flash_attention(qkv, *, heads, dh, scale, n_valid, tq, tk, out_dtype):
    """qkv: (b, n_p, 3*heads*dh) fused projection. Returns (b, n_p, heads*dh)
    already in merged-head 'b n (h d)' order."""
    b, n_p, inner3 = qkv.shape
    inner = inner3 // 3
    h_blk = _pick_head_block(heads, dh)
    hd = h_blk * dh
    n_hg = heads // h_blk                 # head groups == column blocks per q/k/v
    padded = n_p != n_valid

    kernel = functools.partial(
        _flash_attn_kernel, scale=scale, n_valid=n_valid, tk=tk,
        h_blk=h_blk, dh=dh, padded=padded)

    grid = (b, n_hg, n_p // tq, n_p // tk)
    return pl.pallas_call(
        kernel,
        out_shape=jax.ShapeDtypeStruct((b, n_p, inner), out_dtype),
        grid_spec=pltpu.PrefetchScalarGridSpec(
            num_scalar_prefetch=0,
            grid=grid,
            in_specs=[
                # Same fused qkv array passed three times; the last-dim block
                # index selects the q / k / v slab for this head group.
                pl.BlockSpec((1, tq, hd),
                             lambda bi, hi, qi, ki: (bi, qi, hi)),
                pl.BlockSpec((1, tk, hd),
                             lambda bi, hi, qi, ki: (bi, ki, n_hg + hi)),
                pl.BlockSpec((1, tk, hd),
                             lambda bi, hi, qi, ki: (bi, ki, 2 * n_hg + hi)),
            ],
            out_specs=pl.BlockSpec((1, tq, hd),
                                   lambda bi, hi, qi, ki: (bi, qi, hi)),
            scratch_shapes=[
                pltpu.VMEM((h_blk, tq, 1), jnp.float32),    # running max
                pltpu.VMEM((h_blk, tq, 1), jnp.float32),    # running denom
                pltpu.VMEM((h_blk, tq, dh), jnp.float32),   # f32 accumulator
            ],
        ),
        compiler_params=pltpu.CompilerParams(
            dimension_semantics=("parallel", "parallel", "parallel", "arbitrary"),
            vmem_limit_bytes=_VMEM_LIMIT,
        ),
        cost_estimate=pl.CostEstimate(
            flops=4 * b * heads * n_p * n_p * dh,
            transcendentals=b * heads * n_p * n_p,
            bytes_accessed=int(4 * b * n_p * inner
                               * jnp.dtype(out_dtype).itemsize),
        ),
    )(qkv, qkv, qkv)


# ------------------------------ full module ---------------------------------

def attention(x, w_qkv, w_out, b_out, heads, compute_dtype=jnp.bfloat16):
    """x: (b, n, dim); w_qkv: (dim, 3*inner); w_out: (inner, dim); b_out: (dim,).
    Weights stored pre-transposed as (in_features, out_features)."""
    b, n, dim = x.shape
    inner3 = w_qkv.shape[1]
    inner = inner3 // 3
    dh = inner // heads
    scale = float(dh) ** -0.5
    project_out = not (heads == 1 and dh == dim)
    cd = compute_dtype
    x_dtype = x.dtype

    # Sequence padding / attention tiles. Small sequences run as a single tile;
    # long ones use 256-wide tiles when possible (fills the 256-wide MXU on
    # v6e/v7x), else 128.
    if n <= 256:
        n_p = _round_up(n, 16)
        tq = tk = n_p
    else:
        n_p = _round_up(n, 128)
        tq = tk = 256 if n_p % 256 == 0 else 128

    # Pad the token axis ONCE, before the QKV projection (padded rows project to
    # zeros; padded keys are masked in-kernel, padded query rows sliced off).
    if n_p != n:
        x = jnp.pad(x, ((0, 0), (0, n_p - n), (0, 0)))

    # QKV projection (bias-free nn.Linear); bf16 MXU operands, f32 accumulation.
    qkv = _linear(x.reshape(b * n_p, dim).astype(cd), w_qkv.astype(cd), None,
                  out_dtype=cd)                         # (b*n_p, 3*inner)
    qkv = qkv.reshape(b, n_p, inner3)                   # free row-major reshape

    # Flash attention straight on the fused qkv layout; output already in
    # merged-head 'b n (h d)' order -- no HBM head transposes.
    out = _flash_attention(qkv, heads=heads, dh=dh, scale=scale, n_valid=n,
                           tq=tq, tk=tk, out_dtype=cd)  # (b, n_p, inner)

    # Output projection (nn.Linear + Dropout(0.0) == identity).
    if project_out:
        y = _linear(out.reshape(b * n_p, inner), w_out.astype(cd), b_out,
                    out_dtype=x_dtype).reshape(b, n_p, dim)
    else:
        y = out.astype(x_dtype)
    return y[:, :n, :] if n_p != n else y


def _reference(x, w_qkv, w_out, b_out, heads, compute_dtype=jnp.bfloat16):
    """Module math in plain jnp with the same operand precision as the kernels."""
    b, n, dim = x.shape
    inner = w_qkv.shape[1] // 3
    dh = inner // heads
    scale = float(dh) ** -0.5
    cd = compute_dtype

    qkv = jnp.dot(x.astype(cd), w_qkv.astype(cd),
                  preferred_element_type=jnp.float32).astype(cd)
    qkv = qkv.reshape(b, n, 3, heads, dh).transpose(2, 0, 3, 1, 4)
    q, k, v = qkv[0], qkv[1], qkv[2]                               # (b, h, n, d)
    dots = jnp.einsum('bhid,bhjd->bhij', q, k,
                      preferred_element_type=jnp.float32) * scale
    attn = jax.nn.softmax(dots, axis=-1)
    out = jnp.einsum('bhij,bhjd->bhid', attn.astype(cd), v,
                     preferred_element_type=jnp.float32).astype(cd)
    out = out.transpose(0, 2, 1, 3).reshape(b, n, inner)
    y = jnp.dot(out.astype(cd), w_out.astype(cd),
                preferred_element_type=jnp.float32) + b_out
    return y.astype(x.dtype)


if __name__ == "__main__":
    # Small shapes consistent with the module defaults (heads=8, dim_head=64).
    heads, dim_head = 8, 64
    inner = heads * dim_head                                       # 512
    batch, dim = 2, 128

    key = jax.random.PRNGKey(0)
    kx, kq, ko, kb = jax.random.split(key, 4)
    w_qkv = jax.random.normal(kq, (dim, inner * 3), dtype=jnp.float32) * 0.05
    w_out = jax.random.normal(ko, (inner, dim), dtype=jnp.float32) * 0.05
    b_out = jax.random.normal(kb, (dim,), dtype=jnp.float32) * 0.05

    for seq in (16, 10):          # seq=10 exercises the padded/masked kv path
        x = jax.random.normal(kx, (batch, seq, dim), dtype=jnp.float32)
        y = attention(x, w_qkv, w_out, b_out, heads)
        jax.block_until_ready(y)

        y_ref = _reference(x, w_qkv, w_out, b_out, heads)
        assert y.shape == (batch, seq, dim)
        # bf16 MXU operands + f32 accumulation: compare against a reference that
        # uses the same operand precision.
        assert jnp.allclose(y, y_ref, atol=3e-2, rtol=3e-2), float(
            jnp.max(jnp.abs(y - y_ref)))

    print("KERNEL_OK")
</pallas_src>

<mosaic_0001>
module attributes {stable_mosaic.version = 11 : i64} {
  func.func @_linear_nobias_kernel(%arg0: i32, %arg1: memref<16x128xbf16, #tpu.memory_space<vmem>>, %arg2: memref<128x1536xbf16, #tpu.memory_space<vmem>>, %arg3: memref<16x1536xbf16, #tpu.memory_space<vmem>>) attributes {dimension_semantics = [#tpu.dimension_semantics<parallel>], iteration_bounds = array<i64: 2>, scalar_prefetch = 0 : i64, scratch_operands = 0 : i64, tpu.core_type = #tpu.core_type<tc>, window_params = [{transform_indices = @transform_0, window_bounds = array<i64: 16, 128>}, {pipeline_mode = #tpu.pipeline_mode<synchronous>, transform_indices = @transform_1, window_bounds = array<i64: 128, 1536>}, {transform_indices = @transform_2, window_bounds = array<i64: 16, 1536>}]} {
    %c0 = arith.constant 0 : index
    %c0_0 = arith.constant 0 : index
    %0 = vector.load %arg1[%c0, %c0_0] : memref<16x128xbf16, #tpu.memory_space<vmem>>, vector<16x128xbf16>
    %c0_1 = arith.constant 0 : index
    %c0_2 = arith.constant 0 : index
    %1 = vector.load %arg2[%c0_1, %c0_2] : memref<128x1536xbf16, #tpu.memory_space<vmem>>, vector<128x1536xbf16>
    %cst = arith.constant dense<0.000000e+00> : vector<16x1536xf32>
    %2 = tpu.matmul %0, %1, %cst {dimension_numbers = #tpu.dot_dimension_numbers<[1], [0], [0], [1], [0, 0, 1, 1], [], []>} : vector<16x128xbf16>, vector<128x1536xbf16>, vector<16x1536xf32> -> vector<16x1536xf32>
    %3 = arith.truncf %2 : vector<16x1536xf32> to vector<16x1536xbf16>
    %c0_3 = arith.constant 0 : index
    %c0_4 = arith.constant 0 : index
    %4 = vector.load %arg3[%c0_3, %c0_4] : memref<16x1536xbf16, #tpu.memory_space<vmem>>, vector<16x1536xbf16>
    tpu.vector_store %arg3[%c0_3, %c0_4], %3 {strides = array<i32>} : memref<16x1536xbf16, #tpu.memory_space<vmem>>, vector<16x1536xbf16>,
    return
  }
  func.func @transform_0(%arg0: i32) -> (i32, i32) {
    %c0_i32 = arith.constant 0 : i32
    %c0_i32_0 = arith.constant 0 : i32
    return %arg0, %c0_i32 : i32, i32
  }
  func.func @transform_1(%arg0: i32) -> (i32, i32) {
    %c0_i32 = arith.constant 0 : i32
    %c0_i32_0 = arith.constant 0 : i32
    %c0_i32_1 = arith.constant 0 : i32
    return %c0_i32, %c0_i32_0 : i32, i32
  }
  func.func @transform_2(%arg0: i32) -> (i32, i32) {
    %c0_i32 = arith.constant 0 : i32
    %c0_i32_0 = arith.constant 0 : i32
    return %arg0, %c0_i32 : i32, i32
  }
}

</mosaic_0001>

<bundles_post_ra>
// kernel: tpu_custom_call.1
= control target key start
LH: loop header
LB: loop body
LE: loop exit
PB: predicated region body
PF: predicated region fallthrough
CT: control target
= control target key end

     0   :  { %7 = vsyncpa [#allocation3], 0  ;;  %s1911_s0 = inlined_call_operand.hbm [shape: bf16[32,128], index: 0, kind: input, shape index: {}]   ;;  %s1912_s1 = inlined_call_operand.hbm [shape: bf16[128,1536], index: 1, kind: input, shape index: {}]   ;;  %s1913_s2 = inlined_call_operand.hbm [shape: bf16[32,1536], index: 2, kind: output, shape index: {}]  }
   0x1   :  { %9 = vsyncpa [#allocation3 + $0x1], 0 }
   0x2   :  { %10 = vsyncpa [#allocation6], 0 }
   0x3   :  { %11 = vsyncpa [#allocation4], 0 }
   0x4   :  { %13 = vsyncpa [#allocation4 + $0x1], 0  ;;  %s1701_s9 = smov 0   ;;  %s1703_s10 = smov 0  }
   0x5   :  { %s1705_s11 = smov 0   ;;  %s1707_s12 = smov 0  }
   0x6 LB: > { %s1722_s13 = sadd.s32 4294967295, %s1674_s12   ;;  %s1204_s14 = sadd.s32 4294967294, %s1674_s12   ;;  %s1674_s12 = sphi %s1707_s12, %s1935_s12   ;;  %s1670_s11 = sphi %s1705_s11, %s1934_s11   ;;  %s1666_s10 = sphi %s1703_s10, %s1933_s10   ;;  %s1662_s9 = sphi %s1701_s9, %s1932_s9  }
   0x7   : > { %p39_p0 = scmp.ne.s32.totalorder %s1666_s10, %s1662_s9  ;;  %p1914_p1 = scmp.eq.s32.totalorder %s1722_s13, 0 }
   0x8   : > { %p90_p3 = scmp.eq.s32.totalorder %s1204_s14, 1  ;;  %p1205_p5 = scmp.ge.s32.totalorder %s1674_s12, 1 }
   0x9   : > { %p1731_p4 = por %p1914_p1, %p39_p0  ;;  %p97_p7 = scmp.lt.s32.totalorder %s1674_s12, 3 }
   0xa   : > { %p1736_p6 = por %p90_p3, %p39_p0  ;;  %s1676_s18 = smov [#allocation5]  }
   0xb   : > { %s1918_s15 = scalar_select %p1731_p4, 1, 0 }
   0xc   : > { %s1919_s16 = scalar_select %p1736_p6, 1, 0 }
   0xd   : > { %p1741_p8 = pnand %p1205_p5, %p97_p7  ;;  %s109_s19 = sshll.u32 %s1676_s18, 4  ;;  %s110_s19 = int_to_ptr.vmem [resolvable:$true] %s109_s19 }
   0xe   : > { %s1755_s21 = sadd.s32 1, %s1674_s12   ;;  %s26_s22 = sadd.s32 1, %s1670_s11 }
   0xf   : > { %s1920_s17 = scalar_select %p1741_p8, 1, 0 }
  0x10   : > { %p1351_p9 = pneg %p1741_p8  ;;  %s23_s23 = ssub.s32 %s1674_s12, %s1755_s21 }
  0x11   : > { %s1563_s24 = scalar_lea.vmem %s110_s19, 12288  ;;  %p1571_p5 = scmp.lt.s32.totalorder %s110_s19, %s110_s19 }
  0x12   : > { %p1750_p11 = pnand %p1351_p9, %p1914_p1  ;;  %p1564_p13 = scmp.ne.s32.totalorder %s110_s19, %s1563_s24 }
  0x13   : > { %p1572_p7 = scmp.lt.s32.totalorder %s1563_s24, %s1563_s24 }
  0x14   : > { %p1554_p12 = pneg %p1750_p11 }
  0x15   : > { %p1573_p10 = por %p1572_p7, %p1571_p5 }
  0x16   : > { %p1566_p0 = pnand %p1564_p13, %p1554_p12 }
  0x18   : > { %p1567_p3 = pneg %p1566_p0 }
  0x1a   : > { %p1574_p2 = pnand %p1573_p10, %p1567_p3 }
  0x1c   : > { %1577 = shalt.err (!%p1574_p2)
}
  0x1d   : > { %s1677_s25 = smov 768   ;;  %s1678_s26 = smov 48  }
  0x1e   : > { %1354 = dma.hbm_to_vmem [thread:$0]  (!%p1750_p11), %s1912_s1, 12288, %s110_s19, [#allocation6], %s1677_s25, %s1677_s25, %s1678_s26  }
  0x1f   : > { %p24_p9 = scmp.eq.s32.totalorder %s23_s23, 0  ;;  %p33_p12 = scmp.ne.s32.totalorder %s1670_s11, %s1666_s10 }
  0x20   : > { %p34_p10 = scmp.eq.s32.totalorder %s1674_s12, 0  ;;  %p1364_p2 = scmp.lt.s32.totalorder %s1674_s12, 2 }
  0x21   : > { %s1772_s29 = scalar_select %p24_p9, %s1670_s11, %s26_s22  }
  0x22   : > { %p35_p13 = por %p34_p10, %p33_p12  ;;  %p1922_p0 = scmp.eq.s32.totalorder %s1722_s13, 1 }
  0x23   : > { %s123_s3 = sand.u32 1, %s1670_s11   ;;  %s1328_s4 = sshll.u32 %s1674_s12, 7 }
  0x24   : > { %p1776_p3 = por %p1922_p0, %p33_p12  ;;  %s1208_s5 = sshll.u32 %s123_s3, 3 }
  0x25   : > { %s1785_s8 = scalar_lea.hbm %s1911_s0, %s1328_s4  ;;  %s127_s14 = scalar_lea.vmem [#allocation2], %s1208_s5 }
  0x26   : > { %s1923_s30 = scalar_select %p1776_p3, 1, 0 }
  0x27   : > { %s134_s18 = sshll.u32 %s127_s14, 4  ;;  %p1787_p11 = pnand %p1364_p2, %p35_p13  ;;  %s1791_s18 = int_to_ptr.vmem [resolvable:$true] %s134_s18 }
  0x28   : > { %s1793_s20 = scalar_lea.sflag [#allocation3], %s123_s3  ;;  %s1578_s22 = scalar_lea.hbm %s1785_s8, 128 }
  0x29   : > { %p1579_p5 = scmp.ne.s32.totalorder %s1785_s8, %s1578_s22  ;;  %p1580_p7 = pneg %p1787_p11 }
  0x2a   : > { %s1583_s25 = scalar_lea.hbm %s1911_s0, 256  ;;  %p1584_p10 = scmp.lt.s32.totalorder %s1785_s8, %s1911_s0 }
  0x2b   : > { %p1581_p9 = pnand %p1580_p7, %p1579_p5  ;;  %p1585_p2 = scmp.lt.s32.totalorder %s1583_s25, %s1578_s22 }
  0x2d   : > { %p1582_p12 = pneg %p1581_p9  ;;  %p1586_p13 = por %p1585_p2, %p1584_p10 }
  0x2f   : > { %p1587_p0 = pnand %p1586_p13, %p1582_p12 }
  0x31   : > { %1590 = shalt.err (!%p1587_p0)
}
  0x32   : > { %s1591_s28 = scalar_lea.vmem %s1791_s18, 128  ;;  %s1679_s3 = smov [#allocation2]  }
  0x33   : > { %p1592_p1 = scmp.ne.s32.totalorder %s1791_s18, %s1591_s28  ;;  %s1596_s4 = sshll.u32 %s1679_s3, 4  ;;  %s1597_s4 = int_to_ptr.vmem [resolvable:$false] %s1596_s4 }
  0x34   : > { %s1598_s5 = scalar_lea.vmem %s1597_s4, 256  ;;  %p1599_p9 = scmp.lt.s32.totalorder %s1791_s18, %s1597_s4 }
  0x35   : > { %p1594_p6 = pnand %p1592_p1, %p1580_p7  ;;  %p1600_p3 = scmp.lt.s32.totalorder %s1598_s5, %s1591_s28 }
  0x37   : > { %p1595_p5 = pneg %p1594_p6  ;;  %p1601_p4 = por %p1600_p3, %p1599_p9 }
  0x39   : > { %p1602_p8 = pnand %p1601_p4, %p1595_p5 }
  0x3b   : > { %1605 = shalt.err (!%p1602_p8)
}
  0x3c   : > { %s1680_s6 = smov 64   ;;  %s1681_s7 = smov 4  }
  0x3d   : > { %1358 = dma.hbm_to_vmem [thread:$0]  (!%p1787_p11), %s1785_s8, 128, %s1791_s18, %s1793_s20, %s1680_s6, %s1680_s6, %s1681_s7  }
  0x3e   : > { %p1925_p1 = scmp.ne.s32.totalorder %s1920_s17, 0 }
  0x3f   : > { %s1817_s14 = sand.u32 (!%p1925_p1), 1, %s1666_s10   ;;  %p1926_p4 = scmp.ne.s32.totalorder (!%p1925_p1), %s1918_s15, 0 }
  0x40   : > { %146 = sbr.rel (%p1925_p1) target bundleno = 386 (0x182), region = 28  ;;  %s1212_s22 = sshll.u32 (!%p1925_p1), %s1817_s14, 3 }
  0x41   : > { %s149_s23 = scalar_lea.sflag (!%p1925_p1), [#allocation3], %s1817_s14  ;;  %s1821_s24 = scalar_lea.vmem (!%p1925_p1), [#allocation2], %s1212_s22 }
  0x45   : > { %1649 = dma.done.wait (%p1926_p4), %s149_s23, 128  }
  0x46   : > { %1651 = vsyncadd (%p1926_p4), %s149_s23, 4294967168  ;;  %p1927_p6 = scmp.eq.s32.totalorder %s1722_s13, 0 }
  0x48   : > { %1653 = dma.done.wait (%p1927_p6), [#allocation6], 12288   ;;  %p1928_p8 = pmov %p1927_p6 }
  0x49   : > { %v1682_v0 = vmov 0   ;;  %v1407_v1 = vld [vmem:[#allocation5 + $0x2a4] ss:$48 sps:$4 sm:$0xff]   ;;  %v1409_v2 = vld [vmem:[#allocation5 + $0x2ac] ss:$48 sps:$4 sm:$0xff]   ;;  %s1341_s15 = smul.u32 96, %s1817_s14 }
  0x4a   : > { %1655 = vsyncadd (%p1928_p8), [#allocation6], 4294955008  ;;  %796 = vmatprep.mubr.bf16.mxu0 %v1682_v0  ;;  %839 = vmatprep.mubr.bf16.mxu1 %v1682_v0  ;;  %v1411_v3 = vld [vmem:[#allocation5 + $0x2a0] ss:$48 sps:$4 sm:$0xff]   ;;  %v1412_v4 = vld [vmem:[#allocation5 + $0x2a8] ss:$48 sps:$4 sm:$0xff]  }
  0x4b   : > { %764 = vmatprep.subr.bf16.mxu0 %v1407_v1  ;;  %807 = vmatprep.subr.bf16.mxu1 %v1409_v2  ;;  %v1413_v5 = vld [vmem:[#allocation5 + $0x244] ss:$48 sps:$4 sm:$0xff]   ;;  %v1415_v6 = vld [vmem:[#allocation5 + $0x24c] ss:$48 sps:$4 sm:$0xff]   ;;  %v1417_v7 = vld [vmem:[#allocation5 + $0x240] ss:$48 sps:$4 sm:$0xff]  }
  0x4c   : > { %765 = vmatpush1.bf16.msra.mxu0 %v1411_v3  ;;  %808 = vmatpush1.bf16.msra.mxu1 %v1412_v4  ;;  %v1418_v8 = vld [vmem:[#allocation5 + $0x248] ss:$48 sps:$4 sm:$0xff]   ;;  %v1419_v9 = vld [vmem:[#allocation5 + $0x1e4] ss:$48 sps:$4 sm:$0xff]   ;;  %v1421_v10 = vld [vmem:[#allocation5 + $0x1ec] ss:$48 sps:$4 sm:$0xff]  }
  0x4d   : > { %766 = vmatprep.subr.bf16.mxu0 %v1413_v5  ;;  %809 = vmatprep.subr.bf16.mxu1 %v1415_v6  ;;  %v1423_v11 = vld [vmem:[#allocation5 + $0x1e0] ss:$48 sps:$4 sm:$0xff]   ;;  %v1424_v12 = vld [vmem:[#allocation5 + $0x1e8] ss:$48 sps:$4 sm:$0xff]   ;;  %v1425_v13 = vld [vmem:[#allocation5 + $0x184] ss:$48 sps:$4 sm:$0xff]  }
  0x4e   : > { %v1427_v14 = vld [vmem:[#allocation5 + $0x18c] ss:$48 sps:$4 sm:$0xff]   ;;  %v1429_v15 = vld [vmem:[#allocation5 + $0x180] ss:$48 sps:$4 sm:$0xff]   ;;  %v1430_v16 = vld [vmem:[#allocation5 + $0x188] ss:$48 sps:$4 sm:$0xff]  }
  0x4f   : > { %v1431_v17 = vld [vmem:[#allocation5 + $0x124] ss:$48 sps:$4 sm:$0xff]   ;;  %v1433_v18 = vld [vmem:[#allocation5 + $0x12c] ss:$48 sps:$4 sm:$0xff]   ;;  %v1435_v19 = vld [vmem:[#allocation5 + $0x120] ss:$48 sps:$4 sm:$0xff]  }
  0x50   : > { %767 = vmatpush1.bf16.msra.mxu0 %v1417_v7  ;;  %810 = vmatpush1.bf16.msra.mxu1 %v1418_v8  ;;  %v1436_v20 = vld [vmem:[#allocation5 + $0x128] ss:$48 sps:$4 sm:$0xff]   ;;  %v1437_v21 = vld [vmem:[#allocation5 + $0xc4] ss:$48 sps:$4 sm:$0xff]   ;;  %v1439_v22 = vld [vmem:[#allocation5 + $0xcc] ss:$48 sps:$4 sm:$0xff]  }
  0x51   : > { %768 = vmatprep.subr.bf16.mxu0 %v1419_v9  ;;  %811 = vmatprep.subr.bf16.mxu1 %v1421_v10  ;;  %v1441_v23 = vld [vmem:[#allocation5 + $0xc0] ss:$48 sps:$4 sm:$0xff]   ;;  %v1442_v24 = vld [vmem:[#allocation5 + $0xc8] ss:$48 sps:$4 sm:$0xff]   ;;  %v1443_v25 = vld [vmem:[#allocation5 + $0x64] ss:$48 sps:$4 sm:$0xff]  }
  0x52   : > { %v1445_v26 = vld [vmem:[#allocation5 + $0x6c] ss:$48 sps:$4 sm:$0xff]   ;;  %v1447_v27 = vld [vmem:[#allocation5 + $0x60] ss:$48 sps:$4 sm:$0xff]   ;;  %v1448_v28 = vld [vmem:[#allocation5 + $0x68] ss:$48 sps:$4 sm:$0xff]  }
  0x53   : > { %v1449_v29 = vld [vmem:[#allocation5 + $0x4] ss:$48 sps:$4 sm:$0xff]   ;;  %v1451_v30 = vld [vmem:[#allocation5 + $0xc] ss:$48 sps:$4 sm:$0xff]   ;;  %v1453_v31 = vld [vmem:[#allocation5] ss:$48 sps:$4 sm:$0xff]  }
  0x54   : > { %769 = vmatpush1.bf16.msra.mxu0 %v1423_v11  ;;  %812 = vmatpush1.bf16.msra.mxu1 %v1424_v12  ;;  %v1454_v32 = vld [vmem:[#allocation5 + $0x8] ss:$48 sps:$4 sm:$0xff]   ;;  %v1458_v33 = vld [vmem:[#allocation5 + $0x2b4] ss:$48 sps:$4 sm:$0xff]   ;;  %v1461_v34 = vld [vmem:[#allocation5 + $0x2bc] ss:$48 sps:$4 sm:$0xff]  }
  0x55   : > { %770 = vmatprep.subr.bf16.mxu0 %v1425_v13  ;;  %813 = vmatprep.subr.bf16.mxu1 %v1427_v14  ;;  %v1834_v35 = vld [vmem:[%s1821_s24] sm:$0xff]   ;;  %s1847_s17 = scalar_lea.vmem [#allocation7], %s1341_s15  ;;  %s1342_s8 = smul.u32 1536, %s1722_s13 }
  0x56   : > { %v1456_v36 = vld [vmem:[#allocation5 + $0x2b0] ss:$48 sps:$4 sm:$0xff]   ;;  %v1459_v37 = vld [vmem:[#allocation5 + $0x2b8] ss:$48 sps:$4 sm:$0xff]   ;;  %v1464_v38 = vld [vmem:[#allocation5 + $0x254] ss:$48 sps:$4 sm:$0xff]  }
  0x57   : > { %v1467_v39 = vld [vmem:[#allocation5 + $0x25c] ss:$48 sps:$4 sm:$0xff]   ;;  %v1462_v40 = vld [vmem:[#allocation5 + $0x250] ss:$48 sps:$4 sm:$0xff]   ;;  %v1465_v41 = vld [vmem:[#allocation5 + $0x258] ss:$48 sps:$4 sm:$0xff]   ;;  %s1864_s25 = scalar_lea.hbm %s1913_s2, %s1342_s8 }
  0x58   : > { %771 = vmatpush1.bf16.msra.mxu0 %v1429_v15  ;;  %814 = vmatpush1.bf16.msra.mxu1 %v1430_v16  ;;  %v1470_v42 = vld [vmem:[#allocation5 + $0x1f4] ss:$48 sps:$4 sm:$0xff]   ;;  %v1473_v43 = vld [vmem:[#allocation5 + $0x1fc] ss:$48 sps:$4 sm:$0xff]   ;;  %v1468_v44 = vld [vmem:[#allocation5 + $0x1f0] ss:$48 sps:$4 sm:$0xff]  }
  0x59   : > { %772 = vmatprep.subr.bf16.mxu0 %v1431_v17  ;;  %815 = vmatprep.subr.bf16.mxu1 %v1433_v18  ;;  %v1471_v45 = vld [vmem:[#allocation5 + $0x1f8] ss:$48 sps:$4 sm:$0xff]   ;;  %v1476_v46 = vld [vmem:[#allocation5 + $0x194] ss:$48 sps:$4 sm:$0xff]   ;;  %v1479_v47 = vld [vmem:[#allocation5 + $0x19c] ss:$48 sps:$4 sm:$0xff]  }
  0x5a   : > { %v1474_v48 = vld [vmem:[#allocation5 + $0x190] ss:$48 sps:$4 sm:$0xff]   ;;  %v1477_v49 = vld [vmem:[#allocation5 + $0x198] ss:$48 sps:$4 sm:$0xff]   ;;  %v1482_v50 = vld [vmem:[#allocation5 + $0x134] ss:$48 sps:$4 sm:$0xff]  }
  0x5b   : > { %v1485_v51 = vld [vmem:[#allocation5 + $0x13c] ss:$48 sps:$4 sm:$0xff]   ;;  %v1480_v52 = vld [vmem:[#allocation5 + $0x130] ss:$48 sps:$4 sm:$0xff]   ;;  %v1483_v53 = vld [vmem:[#allocation5 + $0x138] ss:$48 sps:$4 sm:$0xff]  }
  0x5c   : > { %773 = vmatpush1.bf16.msra.mxu0 %v1435_v19  ;;  %816 = vmatpush1.bf16.msra.mxu1 %v1436_v20  ;;  %v1488_v54 = vld [vmem:[#allocation5 + $0xd4] ss:$48 sps:$4 sm:$0xff]   ;;  %v1491_v55 = vld [vmem:[#allocation5 + $0xdc] ss:$48 sps:$4 sm:$0xff]   ;;  %v1486_v56 = vld [vmem:[#allocation5 + $0xd0] ss:$48 sps:$4 sm:$0xff]  }
  0x5d   : > { %774 = vmatprep.subr.bf16.mxu0 %v1437_v21  ;;  %817 = vmatprep.subr.bf16.mxu1 %v1439_v22  ;;  %v1489_v57 = vld [vmem:[#allocation5 + $0xd8] ss:$48 sps:$4 sm:$0xff]   ;;  %v1494_v58 = vld [vmem:[#allocation5 + $0x74] ss:$48 sps:$4 sm:$0xff]   ;;  %v1497_v59 = vld [vmem:[#allocation5 + $0x7c] ss:$48 sps:$4 sm:$0xff]  }
  0x5e   : > { %v1492_v60 = vld [vmem:[#allocation5 + $0x70] ss:$48 sps:$4 sm:$0xff]   ;;  %v1495_v61 = vld [vmem:[#allocation5 + $0x78] ss:$48 sps:$4 sm:$0xff]   ;;  %v1500_v62 = vld [vmem:[#allocation5 + $0x14] ss:$48 sps:$4 sm:$0xff]  }
  0x5f   : > { %v1503_v63 = vld [vmem:[#allocation5 + $0x1c] ss:$48 sps:$4 sm:$0xff]   ;;  %v1498_v1 = vld [vmem:[#allocation5 + $0x10] ss:$48 sps:$4 sm:$0xff]   ;;  %v1501_v2 = vld [vmem:[#allocation5 + $0x18] ss:$48 sps:$4 sm:$0xff]  }
  0x60   : > { %775 = vmatpush1.bf16.msra.mxu0 %v1441_v23  ;;  %818 = vmatpush1.bf16.msra.mxu1 %v1442_v24  ;;  %v1506_v3 = vld [vmem:[#allocation5 + $0x2c4] ss:$48 sps:$4 sm:$0xff]   ;;  %v1509_v4 = vld [vmem:[#allocation5 + $0x2cc] ss:$48 sps:$4 sm:$0xff]   ;;  %v1504_v5 = vld [vmem:[#allocation5 + $0x2c0] ss:$48 sps:$4 sm:$0xff]  }
  0x61   : > { %776 = vmatprep.subr.bf16.mxu0 %v1443_v25  ;;  %819 = vmatprep.subr.bf16.mxu1 %v1445_v26  ;;  %v1507_v6 = vld [vmem:[#allocation5 + $0x2c8] ss:$48 sps:$4 sm:$0xff]   ;;  %v1512_v7 = vld [vmem:[#allocation5 + $0x264] ss:$48 sps:$4 sm:$0xff]   ;;  %v1515_v8 = vld [vmem:[#allocation5 + $0x26c] ss:$48 sps:$4 sm:$0xff]  }
  0x62   : > { %v1510_v9 = vld [vmem:[#allocation5 + $0x260] ss:$48 sps:$4 sm:$0xff]   ;;  %v1513_v10 = vld [vmem:[#allocation5 + $0x268] ss:$48 sps:$4 sm:$0xff]   ;;  %v1518_v11 = vld [vmem:[#allocation5 + $0x204] ss:$48 sps:$4 sm:$0xff]  }
  0x63   : > { %v1521_v12 = vld [vmem:[#allocation5 + $0x20c] ss:$48 sps:$4 sm:$0xff]   ;;  %v1516_v13 = vld [vmem:[#allocation5 + $0x200] ss:$48 sps:$4 sm:$0xff]   ;;  %v1519_v14 = vld [vmem:[#allocation5 + $0x208] ss:$48 sps:$4 sm:$0xff]  }
  0x64   : > { %777 = vmatpush1.bf16.msra.mxu0 %v1447_v27  ;;  %820 = vmatpush1.bf16.msra.mxu1 %v1448_v28  ;;  %v1524_v15 = vld [vmem:[#allocation5 + $0x1a4] ss:$48 sps:$4 sm:$0xff]   ;;  %v1527_v16 = vld [vmem:[#allocation5 + $0x1ac] ss:$48 sps:$4 sm:$0xff]   ;;  %v1522_v17 = vld [vmem:[#allocation5 + $0x1a0] ss:$48 sps:$4 sm:$0xff]  }
  0x65   : > { %778 = vmatprep.subr.bf16.mxu0 %v1449_v29  ;;  %821 = vmatprep.subr.bf16.mxu1 %v1451_v30  ;;  %v1525_v18 = vld [vmem:[#allocation5 + $0x1a8] ss:$48 sps:$4 sm:$0xff]   ;;  %v1530_v19 = vld [vmem:[#allocation5 + $0x144] ss:$48 sps:$4 sm:$0xff]   ;;  %v1533_v20 = vld [vmem:[#allocation5 + $0x14c] ss:$48 sps:$4 sm:$0xff]  }
  0x66   : > { %v1528_v21 = vld [vmem:[#allocation5 + $0x140] ss:$48 sps:$4 sm:$0xff]   ;;  %v1536_v22 = vld [vmem:[#allocation5 + $0xe4] ss:$48 sps:$4 sm:$0xff]   ;;  %v1539_v23 = vld [vmem:[#allocation5 + $0xec] ss:$48 sps:$4 sm:$0xff]  }
  0x67   : > { %v1534_v24 = vld [vmem:[#allocation5 + $0xe0] ss:$48 sps:$4 sm:$0xff]   ;;  %v1537_v25 = vld [vmem:[#allocation5 + $0xe8] ss:$48 sps:$4 sm:$0xff]   ;;  %v1542_v26 = vld [vmem:[#allocation5 + $0x84] ss:$48 sps:$4 sm:$0xff]  }
  0x68   : > { %779 = vmatpush1.bf16.msra.mxu0 %v1453_v31  ;;  %822 = vmatpush1.bf16.msra.mxu1 %v1454_v32  ;;  %v1545_v27 = vld [vmem:[#allocation5 + $0x8c] ss:$48 sps:$4 sm:$0xff]   ;;  %v1540_v28 = vld [vmem:[#allocation5 + $0x80] ss:$48 sps:$4 sm:$0xff]   ;;  %v1543_v29 = vld [vmem:[#allocation5 + $0x88] ss:$48 sps:$4 sm:$0xff]  }
  0x69   : > { %850 = vmatprep.subr.bf16.mxu0 %v1458_v33  ;;  %893 = vmatprep.subr.bf16.mxu1 %v1461_v34  ;;  %v1548_v30 = vld [vmem:[#allocation5 + $0x24] ss:$48 sps:$4 sm:$0xff]   ;;  %v1551_v31 = vld [vmem:[#allocation5 + $0x2c] ss:$48 sps:$4 sm:$0xff]   ;;  %v1546_v32 = vld [vmem:[#allocation5 + $0x20] ss:$48 sps:$4 sm:$0xff]  }
  0x6a   : > { %v1549_v33 = vld [vmem:[#allocation5 + $0x28] ss:$48 sps:$4 sm:$0xff]   ;;  %s1121_s18 = sshll.u32 %s1847_s17, 4  ;;  %s1107_s13 = scalar_lea.sflag [#allocation4], %s1817_s14  ;;  %s1866_s18 = int_to_ptr.vmem [resolvable:$true] %s1121_s18 }
  0x6b   : > { %797 = vmatmul.mubr.bf16.vlgmr.msra.gmra.mxu0 %v1834_v35  ;;  %840 = vmatmul.mubr.bf16.vlgmr.msra.gmra.mxu1 %v1834_v35  ;;  %s1606_s26 = scalar_lea.vmem %s1866_s18, 1536  ;;  %p1929_p11 = scmp.ne.s32.totalorder %s1923_s30, 0 }
  0x6c   : > { %851 = vmatpush1.bf16.msra.mxu0 %v1456_v36  ;;  %894 = vmatpush1.bf16.msra.mxu1 %v1459_v37  ;;  %p1607_p3 = scmp.ne.s32.totalorder %s1866_s18, %s1606_s26  ;;  %s1683_s27 = smov [#allocation7]  }
  0x6d   : > { %852 = vmatprep.subr.bf16.mxu0 %v1464_v38  ;;  %895 = vmatprep.subr.bf16.mxu1 %v1467_v39  ;;  %s1610_s28 = sshll.u32 %s1683_s27, 4  ;;  %s1611_s28 = int_to_ptr.vmem [resolvable:$false] %s1610_s28 }
  0x6e   : > { %882 = vmatprep.mubr.bf16.mxu0 %v1682_v0  ;;  %925 = vmatprep.mubr.bf16.mxu1 %v1682_v0  ;;  %p1608_p7 = pnand %p1607_p3, %p1929_p11  ;;  %s1612_s3 = scalar_lea.vmem %s1611_s28, 3072 }
  0x6f   : > { %p1613_p10 = scmp.lt.s32.totalorder %s1866_s18, %s1611_s28  ;;  %p1614_p2 = scmp.lt.s32.totalorder %s1612_s3, %s1606_s26 }
  0x70   : > { %853 = vmatpush1.bf16.msra.mxu0 %v1462_v40  ;;  %896 = vmatpush1.bf16.msra.mxu1 %v1465_v41  ;;  %p1609_p12 = pneg %p1608_p7 }
  0x71   : > { %854 = vmatprep.subr.bf16.mxu0 %v1470_v42  ;;  %897 = vmatprep.subr.bf16.mxu1 %v1473_v43  ;;  %p1615_p13 = por %p1614_p2, %p1613_p10 }
  0x73   : > { %p1616_p0 = pnand %p1615_p13, %p1609_p12 }
  0x74   : > { %855 = vmatpush1.bf16.msra.mxu0 %v1468_v44  ;;  %898 = vmatpush1.bf16.msra.mxu1 %v1471_v45 }
  0x75   : > { %856 = vmatprep.subr.bf16.mxu0 %v1476_v46  ;;  %899 = vmatprep.subr.bf16.mxu1 %v1479_v47 }
  0x78   : > { %857 = vmatpush1.bf16.msra.mxu0 %v1474_v48  ;;  %900 = vmatpush1.bf16.msra.mxu1 %v1477_v49 }
  0x79   : > { %858 = vmatprep.subr.bf16.mxu0 %v1482_v50  ;;  %901 = vmatprep.subr.bf16.mxu1 %v1485_v51 }
  0x7c   : > { %859 = vmatpush1.bf16.msra.mxu0 %v1480_v52  ;;  %902 = vmatpush1.bf16.msra.mxu1 %v1483_v53 }
  0x7d   : > { %860 = vmatprep.subr.bf16.mxu0 %v1488_v54  ;;  %903 = vmatprep.subr.bf16.mxu1 %v1491_v55 }
  0x80   : > { %861 = vmatpush1.bf16.msra.mxu0 %v1486_v56  ;;  %904 = vmatpush1.bf16.msra.mxu1 %v1489_v57 }
  0x81   : > { %862 = vmatprep.subr.bf16.mxu0 %v1494_v58  ;;  %905 = vmatprep.subr.bf16.mxu1 %v1497_v59 }
  0x84   : > { %863 = vmatpush1.bf16.msra.mxu0 %v1492_v60  ;;  %906 = vmatpush1.bf16.msra.mxu1 %v1495_v61 }
  0x85   : > { %864 = vmatprep.subr.bf16.mxu0 %v1500_v62  ;;  %907 = vmatprep.subr.bf16.mxu1 %v1503_v63 }
  0x88   : > { %865 = vmatpush1.bf16.msra.mxu0 %v1498_v1  ;;  %908 = vmatpush1.bf16.msra.mxu1 %v1501_v2 }
  0x89   : > { %936 = vmatprep.subr.bf16.mxu0 %v1506_v3  ;;  %979 = vmatprep.subr.bf16.mxu1 %v1509_v4 }
  0x8b   : > { %883 = vmatmul.mubr.bf16.vlgmr.msra.gmra.mxu0 %v1834_v35  ;;  %926 = vmatmul.mubr.bf16.vlgmr.msra.gmra.mxu1 %v1834_v35 }
  0x8c   : > { %937 = vmatpush1.bf16.msra.mxu0 %v1504_v5  ;;  %980 = vmatpush1.bf16.msra.mxu1 %v1507_v6 }
  0x8d   : > { %938 = vmatprep.subr.bf16.mxu0 %v1512_v7  ;;  %981 = vmatprep.subr.bf16.mxu1 %v1515_v8 }
  0x8e   : > { %968 = vmatprep.mubr.bf16.mxu0 %v1682_v0  ;;  %1011 = vmatprep.mubr.bf16.mxu1 %v1682_v0  ;;  %v1531_v0 = vld [vmem:[#allocation5 + $0x148] ss:$48 sps:$4 sm:$0xff]  }
  0x90   : > { %939 = vmatpush1.bf16.msra.mxu0 %v1510_v9  ;;  %982 = vmatpush1.bf16.msra.mxu1 %v1513_v10 }
  0x91   : > { %940 = vmatprep.subr.bf16.mxu0 %v1518_v11  ;;  %983 = vmatprep.subr.bf16.mxu1 %v1521_v12 }
  0x94   : > { %941 = vmatpush1.bf16.msra.mxu0 %v1516_v13  ;;  %984 = vmatpush1.bf16.msra.mxu1 %v1519_v14 }
  0x95   : > { %942 = vmatprep.subr.bf16.mxu0 %v1524_v15  ;;  %985 = vmatprep.subr.bf16.mxu1 %v1527_v16 }
  0x98   : > { %943 = vmatpush1.bf16.msra.mxu0 %v1522_v17  ;;  %986 = vmatpush1.bf16.msra.mxu1 %v1525_v18 }
  0x99   : > { %944 = vmatprep.subr.bf16.mxu0 %v1530_v19  ;;  %987 = vmatprep.subr.bf16.mxu1 %v1533_v20 }
  0x9c   : > { %945 = vmatpush1.bf16.msra.mxu0 %v1528_v21  ;;  %988 = vmatpush1.bf16.msra.mxu1 %v1531_v0 }
  0x9d   : > { %946 = vmatprep.subr.bf16.mxu0 %v1536_v22  ;;  %989 = vmatprep.subr.bf16.mxu1 %v1539_v23 }
  0xa0   : > { %947 = vmatpush1.bf16.msra.mxu0 %v1534_v24  ;;  %990 = vmatpush1.bf16.msra.mxu1 %v1537_v25 }
  0xa1   : > { %948 = vmatprep.subr.bf16.mxu0 %v1542_v26  ;;  %991 = vmatprep.subr.bf16.mxu1 %v1545_v27 }
  0xa4   : > { %949 = vmatpush1.bf16.msra.mxu0 %v1540_v28  ;;  %992 = vmatpush1.bf16.msra.mxu1 %v1543_v29 }
  0xa5   : > { %950 = vmatprep.subr.bf16.mxu0 %v1548_v30  ;;  %993 = vmatprep.subr.bf16.mxu1 %v1551_v31 }
  0xa8   : > { %951 = vmatpush1.bf16.msra.mxu0 %v1546_v32  ;;  %994 = vmatpush1.bf16.msra.mxu1 %v1549_v33 }
  0xab   : > { %969 = vmatmul.mubr.bf16.vlgmr.msra.gmra.mxu0 %v1834_v35  ;;  %1012 = vmatmul.mubr.bf16.vlgmr.msra.gmra.mxu1 %v1834_v35 }
 0x12b   : > { %v798_v34 = vpop.f32.mrf.mxu0  ;;  %v841_v36 = vpop.f32.mrf.mxu1 }
 0x12d   : > { %v800_v37 = vpop.f32.mrf.mxu0  ;;  %v843_v38 = vpop.f32.mrf.mxu1 }
 0x12e   : > { %v1329_v39 = vpack.c.bf16 %v800_v37, %v798_v34  ;;  %v1330_v40 = vpack.c.bf16 %v843_v38, %v841_v36 }
 0x12f   : > { %v802_v41 = vpop.f32.mrf.mxu0  ;;  %v845_v42 = vpop.f32.mrf.mxu1 }
 0x130   : > { %1094 = vst [vmem:[%s1847_s17] sm:$0xff] %v1329_v39  ;;  %1095 = vst [vmem:[%s1847_s17 + $0x8] sm:$0xff] %v1330_v40 }
 0x131   : > { %v804_v35 = vpop.f32.mrf.mxu0  ;;  %v847_v43 = vpop.f32.mrf.mxu1 }
 0x132   : > { %v1335_v44 = vpack.c.bf16 %v804_v35, %v802_v41  ;;  %v1336_v45 = vpack.c.bf16 %v847_v43, %v845_v42 }
 0x134   : > { %1100 = vst [vmem:[%s1847_s17 + $0x30] sm:$0xff] %v1335_v44  ;;  %1101 = vst [vmem:[%s1847_s17 + $0x38] sm:$0xff] %v1336_v45 }
 0x14b   : > { %v884_v46 = vpop.f32.mrf.mxu0  ;;  %v927_v47 = vpop.f32.mrf.mxu1 }
 0x14d   : > { %v886_v48 = vpop.f32.mrf.mxu0  ;;  %v929_v49 = vpop.f32.mrf.mxu1 }
 0x14e   : > { %v1331_v50 = vpack.c.bf16 %v886_v48, %v884_v46  ;;  %v1332_v51 = vpack.c.bf16 %v929_v49, %v927_v47 }
 0x14f   : > { %v888_v52 = vpop.f32.mrf.mxu0  ;;  %v931_v53 = vpop.f32.mrf.mxu1 }
 0x150   : > { %1096 = vst [vmem:[%s1847_s17 + $0x10] sm:$0xff] %v1331_v50  ;;  %1097 = vst [vmem:[%s1847_s17 + $0x18] sm:$0xff] %v1332_v51 }
 0x151   : > { %v890_v54 = vpop.f32.mrf.mxu0  ;;  %v933_v55 = vpop.f32.mrf.mxu1 }
 0x152   : > { %v1337_v56 = vpack.c.bf16 %v890_v54, %v888_v52  ;;  %v1338_v57 = vpack.c.bf16 %v933_v55, %v931_v53 }
 0x154   : > { %1102 = vst [vmem:[%s1847_s17 + $0x40] sm:$0xff] %v1337_v56  ;;  %1103 = vst [vmem:[%s1847_s17 + $0x48] sm:$0xff] %v1338_v57 }
 0x16b   : > { %v970_v58 = vpop.f32.mrf.mxu0  ;;  %v1013_v59 = vpop.f32.mrf.mxu1 }
 0x16d   : > { %v972_v60 = vpop.f32.mrf.mxu0  ;;  %v1015_v61 = vpop.f32.mrf.mxu1 }
 0x16e   : > { %v1333_v62 = vpack.c.bf16 %v972_v60, %v970_v58  ;;  %v1334_v63 = vpack.c.bf16 %v1015_v61, %v1013_v59 }
 0x16f   : > { %v974_v1 = vpop.f32.mrf.mxu0  ;;  %v1017_v2 = vpop.f32.mrf.mxu1 }
 0x170   : > { %1098 = vst [vmem:[%s1847_s17 + $0x20] sm:$0xff] %v1333_v62  ;;  %1099 = vst [vmem:[%s1847_s17 + $0x28] sm:$0xff] %v1334_v63 }
 0x171   : > { %v976_v3 = vpop.f32.mrf.mxu0  ;;  %v1019_v4 = vpop.f32.mrf.mxu1 }
 0x172   : > { %v1339_v5 = vpack.c.bf16 %v976_v3, %v974_v1  ;;  %v1340_v6 = vpack.c.bf16 %v1019_v4, %v1017_v2 }
 0x174   : > { %1104 = vst [vmem:[%s1847_s17 + $0x50] sm:$0xff] %v1339_v5  ;;  %1105 = vst [vmem:[%s1847_s17 + $0x58] sm:$0xff] %v1340_v6 }
 0x175   : > { %1619 = shalt.err (!%p1616_p0)
}
 0x176   : > { %s1620_s4 = scalar_lea.hbm %s1864_s25, 1536  ;;  %s1624_s7 = scalar_lea.hbm %s1913_s2, 3072 }
 0x177   : > { %p1621_p5 = scmp.ne.s32.totalorder %s1864_s25, %s1620_s4  ;;  %p1625_p4 = scmp.lt.s32.totalorder %s1864_s25, %s1913_s2 }
 0x178   : > { %p1626_p6 = scmp.lt.s32.totalorder %s1624_s7, %s1620_s4 }
 0x179   : > { %p1622_p9 = pnand %p1621_p5, %p1929_p11 }
 0x17a   : > { %p1627_p8 = por %p1626_p6, %p1625_p4 }
 0x17b   : > { %p1623_p1 = pneg %p1622_p9 }
 0x17d   : > { %p1628_p3 = pnand %p1627_p8, %p1623_p1 }
 0x17f   : > { %1631 = shalt.err (!%p1628_p3)
}
 0x180   : > { %s1684_s24 = smov 768   ;;  %s1685_s15 = smov 48  }
 0x181   : > { %1349 = dma.vmem_to_hbm [thread:$0]  (%p1929_p11), %s1866_s18, 1536, %s1864_s25, %s1107_s13, %s1684_s24, %s1684_s24, %s1685_s15  }
 0x182 PF: > { %s1136_s17 = sand.u32 1, %s1662_s9   ;;  %p1930_p7 = scmp.ne.s32.totalorder %s1919_s16, 0 }
 0x183   : > { %p1931_p12 = scmp.ge.s32.totalorder %s1674_s12, 2  ;;  %s1137_s8 = scalar_lea.sflag [#allocation4], %s1136_s17 }
 0x185   : > { %p1360_p10 = pnand %p1931_p12, %p1930_p7 }
 0x187   : > { %p1361_p2 = pneg %p1360_p10 }
 0x189   : > { %1657 = dma.done.wait (%p1361_p2), %s1137_s8, 1536  }
 0x18a   : > { %1659 = vsyncadd (%p1361_p2), %s1137_s8, 4294965760  ;;  %p16_p13 = scmp.ge.s32.totalorder %s1755_s21, 4   ;;  %s1932_s9 = smov %s1666_s10 }
 0x18b   : > { %s1933_s10 = smov %s1670_s11  ;;  %s1934_s11 = smov %s1772_s29 }
 0x18c   : > { %s1935_s12 = smov %s1755_s21  ;;  %18 = sbr.rel (!%p16_p13) target bundleno = 6 (0x6), region = 77 }
 0x191   :  { %1142 = vsyncpa [#allocation3], 1 }
 0x192   :  { %1144 = vsyncpa [#allocation3 + $0x1], 1 }
 0x193   :  { %1145 = vsyncpa [#allocation6], 1 }
 0x194   :  { %1146 = vsyncpa [#allocation4], 1 }
 0x195   :  { %1148 = vsyncpa [#allocation4 + $0x1], 1 }

</bundles_post_ra>
